<compile_context>
chip_gen: v7x
topology: tpu7x:2x2x1
jax: 0.10.0
libtpu: 0.0.40
codegen_flags: <defaults>
</compile_context>

<pallas_src>
import jax
import jax.numpy as jnp
from jax.experimental import pallas as pl
from jax.experimental.pallas import tpu as pltpu

_LANE = 128
_SUB = 8
_TARGET_BLOCK_BYTES = 2 * 1024 * 1024   # ~2 MiB blocks; x4 pipeline buffers = 8 MiB
_MAX_LANES = 2048                        # widest lane fold (review: 512-2048 lanes)


def _copy_kernel(x_ref, o_ref):
    # Pure copy: bit-identical to `return x` (preserves -0.0 and NaN payloads).
    o_ref[...] = x_ref[...]


def _round_up(a, b):
    return ((a + b - 1) // b) * b


@jax.jit
def test_module_forward(x):
    """Pallas equivalent of TestModule.forward (identity pass-through).

    The lazily created nn.Parameter(torch.zeros(1)).cuda() in the PyTorch
    module is a state side effect that never touches the output, so it is not
    an input to the kernel.
    """
    orig_shape = x.shape
    orig_dtype = x.dtype
    n = x.size
    itemsize = jnp.dtype(orig_dtype).itemsize

    # ---- Build a lane-dense 2-D slab (rows, lane) with lane a multiple of 128.
    # Only a <128-element lane tail ever needs padding; the row axis stays
    # ragged and Pallas masks the partial last row-block at the grid boundary.
    x_flat = x.reshape(-1)
    tail_pad = (-n) % _LANE
    if tail_pad:
        # TODO(synk): for lane-unaligned sizes this small pad/slice still costs
        # one extra XLA pass; a manual-DMA (pl.ANY) path would avoid it.
        x_flat = jnp.concatenate(
            [x_flat, jnp.zeros((tail_pad,), dtype=orig_dtype)])
    n_pad = n + tail_pad
    rows128 = n_pad // _LANE

    # Fold lanes as wide as possible (row-major refold => bitcast under jit).
    lane = _LANE
    for cand in (_MAX_LANES, 1024, 512, 256):
        if rows128 % (cand // _LANE) == 0:
            lane = cand
            break
    rows = n_pad // lane
    x2d = x_flat.reshape(rows, lane)

    # ---- Row tile: ~2 MiB blocks, >=4 grid steps on large inputs so the
    # "parallel" row axis can shard across both v7x TensorCores.
    if rows <= _SUB:
        tr = rows                                  # block == full row extent
    else:
        tr = max(_SUB, (_TARGET_BLOCK_BYTES // (lane * itemsize)) // _SUB * _SUB)
        tr_cap = _round_up(pl.cdiv(rows, 4), _SUB)  # aim for >=4 grid steps
        tr = max(_SUB, min(tr, tr_cap))
    grid = (pl.cdiv(rows, tr),)

    out2d = pl.pallas_call(
        _copy_kernel,
        out_shape=jax.ShapeDtypeStruct((rows, lane), orig_dtype),
        grid_spec=pl.GridSpec(
            grid=grid,
            in_specs=[pl.BlockSpec((tr, lane), lambda i: (i, 0))],
            out_specs=pl.BlockSpec((tr, lane), lambda i: (i, 0)),
        ),
        compiler_params=pltpu.CompilerParams(
            dimension_semantics=("parallel",),
            # 2 MiB block x 4 pipeline buffers = 8 MiB; give explicit headroom
            # that is valid on every generation (v5e/v6e 128 MiB, v7x 64 MiB).
            vmem_limit_bytes=32 * 1024 * 1024,
        ),
        # TODO(synk): pass input_output_aliases={0: 0} when the caller donates
        # x (halves peak HBM footprint); omitted here since x stays live.
    )(x2d)

    out_flat = out2d.reshape(-1)
    if tail_pad:
        out_flat = out_flat[:n]
    return out_flat.reshape(orig_shape)


if __name__ == "__main__":
    key = jax.random.PRNGKey(0)
    # Small NCHW input consistent with the module's usage.
    x = jax.random.normal(key, (2, 4, 16, 16), dtype=jnp.float32)

    # The module's lazily-created zero parameter is state only; it does not
    # affect the forward output, so nothing to materialize here.

    y = jax.block_until_ready(test_module_forward(x))

    assert y.shape == x.shape and y.dtype == x.dtype
    assert bool(jnp.all(y == x))
    print("KERNEL_OK")
</pallas_src>

<mosaic_0001>
module attributes {stable_mosaic.version = 11 : i64} {
  func.func @_copy_kernel(%arg0: i32, %arg1: memref<1x2048xf32, #tpu.memory_space<vmem>>, %arg2: memref<1x2048xf32, #tpu.memory_space<vmem>>) attributes {dimension_semantics = [#tpu.dimension_semantics<parallel>], iteration_bounds = array<i64: 1>, scalar_prefetch = 0 : i64, scratch_operands = 0 : i64, tpu.core_type = #tpu.core_type<tc>, window_params = [{transform_indices = @transform_0, window_bounds = array<i64: 1, 2048>}, {transform_indices = @transform_1, window_bounds = array<i64: 1, 2048>}]} {
    %c0 = arith.constant 0 : index
    %c0_0 = arith.constant 0 : index
    %0 = vector.load %arg1[%c0, %c0_0] : memref<1x2048xf32, #tpu.memory_space<vmem>>, vector<1x2048xf32>
    %c0_1 = arith.constant 0 : index
    %c0_2 = arith.constant 0 : index
    %1 = vector.load %arg2[%c0_1, %c0_2] : memref<1x2048xf32, #tpu.memory_space<vmem>>, vector<1x2048xf32>
    tpu.vector_store %arg2[%c0_1, %c0_2], %0 {strides = array<i32>} : memref<1x2048xf32, #tpu.memory_space<vmem>>, vector<1x2048xf32>,
    return
  }
  func.func @transform_0(%arg0: i32) -> (i32, i32) {
    %c0_i32 = arith.constant 0 : i32
    %c0_i32_0 = arith.constant 0 : i32
    return %arg0, %c0_i32 : i32, i32
  }
  func.func @transform_1(%arg0: i32) -> (i32, i32) {
    %c0_i32 = arith.constant 0 : i32
    %c0_i32_0 = arith.constant 0 : i32
    return %arg0, %c0_i32 : i32, i32
  }
}

</mosaic_0001>

<bundles_post_ra>
// kernel: test_module_forward.1
= control target key start
LH: loop header
LB: loop body
LE: loop exit
PB: predicated region body
PF: predicated region fallthrough
CT: control target
= control target key end

     0   :  { %s38_s0 = inlined_call_operand.vmem [shape: f32[1,2048], index: 0, kind: input, shape index: {}]   ;;  %s39_s1 = inlined_call_operand.vmem [shape: f32[1,2048], index: 1, kind: output, shape index: {}]  }
   0x1   :  { %v8_v0 = vld [vmem:[%s38_s0] sm:$0xff]  ;;  %v9_v1 = vld [vmem:[%s38_s0 + $0x8] sm:$0xff] }
   0x2   :  { %10 = vst [vmem:[%s39_s1] sm:$0xff] %v8_v0  ;;  %11 = vst [vmem:[%s39_s1 + $0x8] sm:$0xff] %v9_v1 }

</bundles_post_ra>
